<compile_context>
chip_gen: v6e
topology: v6e:2x2x1
jax: 0.10.0
libtpu: 0.0.40
codegen_flags: <defaults>
</compile_context>

<pallas_src>
import jax
import jax.numpy as jnp
from jax.experimental import pallas as pl
from jax.experimental.pallas import tpu as pltpu


def region_attention_kernel(x_ref, p_ref, bias_ref, q_ref, o_ref):
    # x_ref:    (TB, R, D)  batch tile of regional features
    # p_ref:    (D, R)      projection P
    # bias_ref: (1, R)      bias (broadcast over rows)
    # q_ref:    (R, R)      mixing matrix Q
    # o_ref:    (TB, R, D)  attention output tile
    TB, R, D = x_ref.shape

    x = x_ref[...]                                   # (TB, R, D)
    x_flat = x.reshape(TB * R, D)                    # leading-dim merge, no relayout

    # tanh(x @ P + bias)                              -> (TB*R, R), MXU + f32 acc
    h = jnp.tanh(
        jnp.dot(x_flat, p_ref[...], preferred_element_type=jnp.float32)
        + bias_ref[...]
    )
    # scores = h @ Q                                  -> (TB, R_i, R_j)
    s = jnp.dot(h, q_ref[...], preferred_element_type=jnp.float32).reshape(TB, R, R)

    # softmax over the source-region axis (PyTorch dim=1 of the (B, R, R) scores)
    e = jnp.exp(s - jnp.max(s, axis=1, keepdims=True))          # (TB, R, R)
    denom = jnp.sum(e, axis=1, keepdims=True)                    # (TB, 1, R)
    # exact reciprocal keeps the 1e-5 self-test; approx=True would be EUP-free
    w = e * pl.reciprocal(denom, approx=False)                   # (TB, R, R)

    # attention_feature[b, j, d] = sum_i x[b, i, d] * W[b, i, j]
    out = jnp.einsum(
        "bij,bid->bjd",
        w.astype(x.dtype),
        x,
        preferred_element_type=jnp.float32,
    )
    o_ref[...] = out.astype(o_ref.dtype)


def _pick_tb(B, tb_max=128, min_tiles=2):
    """Largest tile <= tb_max that still yields >= min_tiles grid steps."""
    if B <= 8:
        return B
    return max(1, min(tb_max, pl.cdiv(B, min_tiles)))


def region_attention(x, P, bias, Q, *, tb=None):
    """Pallas RegionAttention forward. x: (B, R, D) with D = 2*regional_size."""
    B, R, D = x.shape
    assert P.shape == (D, R) and Q.shape == (R, R) and bias.shape == (R,)
    bias2d = bias.reshape(1, R)

    if tb is None:
        tb = _pick_tb(B)
    tb = max(1, min(int(tb), B))
    n_tiles = pl.cdiv(B, tb)          # ragged last block handled by Pallas masking

    bpe = jnp.dtype(x.dtype).itemsize
    cost = pl.CostEstimate(
        flops=B * (4 * R * R * D + 2 * R * R * R),          # x@P + h@Q + final contraction
        transcendentals=B * 2 * R * R,                       # tanh + exp
        bytes_accessed=2 * B * R * D * bpe + (D * R + R + R * R) * 4,
    )

    return pl.pallas_call(
        region_attention_kernel,
        out_shape=jax.ShapeDtypeStruct((B, R, D), x.dtype),
        grid_spec=pltpu.PrefetchScalarGridSpec(
            num_scalar_prefetch=0,
            grid=(n_tiles,),
            in_specs=[
                pl.BlockSpec((tb, R, D), lambda b: (b, 0, 0)),
                pl.BlockSpec((D, R), lambda b: (0, 0)),
                pl.BlockSpec((1, R), lambda b: (0, 0)),
                pl.BlockSpec((R, R), lambda b: (0, 0)),
            ],
            out_specs=pl.BlockSpec((tb, R, D), lambda b: (b, 0, 0)),
        ),
        compiler_params=pltpu.CompilerParams(
            dimension_semantics=("parallel",),
            vmem_limit_bytes=32 * 1024 * 1024,
        ),
        cost_estimate=cost,
    )(x, P, bias2d, Q)


def init_params(key, regional_size, regions):
    """Deterministic re-creation of the module's _init_weights()."""
    k_p, k_q = jax.random.split(key)
    d = 2 * regional_size
    # xavier_normal_ with tanh gain (= 5/3)
    gain_tanh = 5.0 / 3.0
    std = gain_tanh * jnp.sqrt(2.0 / (d + regions))
    P = std * jax.random.normal(k_p, (d, regions), dtype=jnp.float32)
    # orthogonal_ with gain 1.414 via QR
    a = jax.random.normal(k_q, (regions, regions), dtype=jnp.float32)
    q_mat, r_mat = jnp.linalg.qr(a)
    q_mat = q_mat * jnp.sign(jnp.diag(r_mat))  # make QR decomposition unique
    Q = 1.414 * q_mat
    bias = jnp.zeros((regions,), dtype=jnp.float32)
    return P, bias, Q


def region_attention_reference(x, P, bias, Q):
    """Plain-JAX reference mirroring the PyTorch forward."""
    s = jnp.tanh(jnp.matmul(x, P) + bias)          # (B, R, R)
    w = jax.nn.softmax(jnp.matmul(s, Q), axis=1)   # softmax over dim=1
    xt = jnp.swapaxes(x, 1, 2)                     # (B, D, R)
    att = jnp.matmul(xt, w)                        # (B, D, R)
    return jnp.swapaxes(att, 1, 2)                 # (B, R, D)


if __name__ == "__main__":
    # Shapes consistent with the module: regions=16, regional_size=64 -> D = 128.
    regions, regional_size = 16, 64
    D = 2 * regional_size

    key = jax.random.PRNGKey(0)
    k1, k2, k3, kp = jax.random.split(key, 4)
    P, bias, Q = init_params(kp, regional_size, regions)

    # Case 1: tiny batch, single tile (tb == B).
    x1 = jax.random.normal(k1, (4, regions, D), dtype=jnp.float32)
    o1 = jax.block_until_ready(region_attention(x1, P, bias, Q))
    r1 = region_attention_reference(x1, P, bias, Q)
    assert o1.shape == (4, regions, D)
    assert jnp.allclose(o1, r1, atol=1e-5, rtol=1e-5), "mismatch vs reference (B=4)"

    # Case 2: ragged last block (B % tb != 0) -- no wrapper pad/slice, relies on
    # Pallas masking the out-of-bounds edge-block writes.
    x2 = jax.random.normal(k2, (40, regions, D), dtype=jnp.float32)
    o2 = jax.block_until_ready(region_attention(x2, P, bias, Q, tb=16))
    r2 = region_attention_reference(x2, P, bias, Q)
    assert o2.shape == (40, regions, D)
    assert jnp.allclose(o2, r2, atol=1e-5, rtol=1e-5), "mismatch vs reference (ragged B=40, tb=16)"

    # Case 3: default tile selection (tb=80 here) -> exactly 2 full tiles, so the
    # single "parallel" grid axis feeds both TensorCores on v7x.
    x3 = jax.random.normal(k3, (160, regions, D), dtype=jnp.float32)
    o3 = jax.block_until_ready(region_attention(x3, P, bias, Q))
    r3 = region_attention_reference(x3, P, bias, Q)
    assert o3.shape == (160, regions, D)
    assert jnp.allclose(o3, r3, atol=1e-5, rtol=1e-5), "mismatch vs reference (B=160)"

    print("KERNEL_OK")
</pallas_src>

<mosaic_0001>
module attributes {stable_mosaic.version = 11 : i64} {
  func.func @region_attention_kernel(%arg0: i32, %arg1: memref<4x16x128xf32, #tpu.memory_space<vmem>>, %arg2: memref<128x16xf32, #tpu.memory_space<vmem>>, %arg3: memref<1x16xf32, #tpu.memory_space<vmem>>, %arg4: memref<16x16xf32, #tpu.memory_space<vmem>>, %arg5: memref<4x16x128xf32, #tpu.memory_space<vmem>>) attributes {dimension_semantics = [#tpu.dimension_semantics<parallel>], iteration_bounds = array<i64: 1>, scalar_prefetch = 0 : i64, scratch_operands = 0 : i64, tpu.core_type = #tpu.core_type<tc>, window_params = [{transform_indices = @transform_0, window_bounds = array<i64: 4, 16, 128>}, {pipeline_mode = #tpu.pipeline_mode<synchronous>, transform_indices = @transform_1, window_bounds = array<i64: 128, 16>}, {pipeline_mode = #tpu.pipeline_mode<synchronous>, transform_indices = @transform_2, window_bounds = array<i64: 1, 16>}, {pipeline_mode = #tpu.pipeline_mode<synchronous>, transform_indices = @transform_3, window_bounds = array<i64: 16, 16>}, {transform_indices = @transform_4, window_bounds = array<i64: 4, 16, 128>}]} {
    %c0 = arith.constant 0 : index
    %c0_0 = arith.constant 0 : index
    %c0_1 = arith.constant 0 : index
    %0 = vector.load %arg1[%c0, %c0_0, %c0_1] : memref<4x16x128xf32, #tpu.memory_space<vmem>>, vector<4x16x128xf32>
    %1 = vector.shape_cast %0 : vector<4x16x128xf32> to vector<64x128xf32>
    %c0_2 = arith.constant 0 : index
    %c0_3 = arith.constant 0 : index
    %2 = vector.load %arg2[%c0_2, %c0_3] : memref<128x16xf32, #tpu.memory_space<vmem>>, vector<128x16xf32>
    %cst = arith.constant dense<0.000000e+00> : vector<64x16xf32>
    %3 = tpu.matmul %1, %2, %cst {dimension_numbers = #tpu.dot_dimension_numbers<[1], [0], [0], [1], [0, 0, 1, 1], [], []>} : vector<64x128xf32>, vector<128x16xf32>, vector<64x16xf32> -> vector<64x16xf32>
    %c0_4 = arith.constant 0 : index
    %c0_5 = arith.constant 0 : index
    %4 = vector.load %arg3[%c0_4, %c0_5] : memref<1x16xf32, #tpu.memory_space<vmem>>, vector<1x16xf32>
    %5 = vector.broadcast %4 : vector<1x16xf32> to vector<64x16xf32>
    %6 = arith.addf %3, %5 : vector<64x16xf32>
    %7 = math.tanh %6 : vector<64x16xf32>
    %c0_6 = arith.constant 0 : index
    %c0_7 = arith.constant 0 : index
    %8 = vector.load %arg4[%c0_6, %c0_7] : memref<16x16xf32, #tpu.memory_space<vmem>>, vector<16x16xf32>
    %cst_8 = arith.constant dense<0.000000e+00> : vector<64x16xf32>
    %9 = tpu.matmul %7, %8, %cst_8 {dimension_numbers = #tpu.dot_dimension_numbers<[1], [0], [0], [1], [0, 0, 1, 1], [], []>} : vector<64x16xf32>, vector<16x16xf32>, vector<64x16xf32> -> vector<64x16xf32>
    %10 = vector.shape_cast %9 : vector<64x16xf32> to vector<4x16x16xf32>
    %cst_9 = arith.constant dense<0xFF800000> : vector<4x16xf32>
    %11 = vector.multi_reduction <maximumf>, %10, %cst_9 [1] : vector<4x16x16xf32> to vector<4x16xf32>
    %12 = vector.shape_cast %11 : vector<4x16xf32> to vector<4x1x16xf32>
    %13 = vector.broadcast %12 : vector<4x1x16xf32> to vector<4x16x16xf32>
    %14 = arith.subf %10, %13 : vector<4x16x16xf32>
    %15 = math.exp %14 : vector<4x16x16xf32>
    %cst_10 = arith.constant dense<0.000000e+00> : vector<4x16xf32>
    %16 = vector.multi_reduction <add>, %15, %cst_10 [1] : vector<4x16x16xf32> to vector<4x16xf32>
    %17 = vector.shape_cast %16 : vector<4x16xf32> to vector<4x1x16xf32>
    %18 = tpu.reciprocal %17 : vector<4x1x16xf32> -> vector<4x1x16xf32>
    %19 = vector.broadcast %18 : vector<4x1x16xf32> to vector<4x16x16xf32>
    %20 = arith.mulf %15, %19 : vector<4x16x16xf32>
    "tpu.trace_start"() <{level = 10 : i32, message = "bij,bid->bjd"}> : () -> ()
    %cst_11 = arith.constant dense<0.000000e+00> : vector<4x16x128xf32>
    %21 = tpu.matmul %20, %0, %cst_11 {dimension_numbers = #tpu.dot_dimension_numbers<[1], [1], [2], [2], [0, 0, 0, 2, 1, 2], [0], [0]>} : vector<4x16x16xf32>, vector<4x16x128xf32>, vector<4x16x128xf32> -> vector<4x16x128xf32>
    "tpu.trace_stop"() : () -> ()
    %c0_12 = arith.constant 0 : index
    %c0_13 = arith.constant 0 : index
    %c0_14 = arith.constant 0 : index
    %22 = vector.load %arg5[%c0_12, %c0_13, %c0_14] : memref<4x16x128xf32, #tpu.memory_space<vmem>>, vector<4x16x128xf32>
    tpu.vector_store %arg5[%c0_12, %c0_13, %c0_14], %21 {strides = array<i32>} : memref<4x16x128xf32, #tpu.memory_space<vmem>>, vector<4x16x128xf32>,
    return
  }
  func.func @transform_0(%arg0: i32) -> (i32, i32, i32) {
    %c0_i32 = arith.constant 0 : i32
    %c0_i32_0 = arith.constant 0 : i32
    %c0_i32_1 = arith.constant 0 : i32
    return %arg0, %c0_i32, %c0_i32_0 : i32, i32, i32
  }
  func.func @transform_1(%arg0: i32) -> (i32, i32) {
    %c0_i32 = arith.constant 0 : i32
    %c0_i32_0 = arith.constant 0 : i32
    %c0_i32_1 = arith.constant 0 : i32
    return %c0_i32, %c0_i32_0 : i32, i32
  }
  func.func @transform_2(%arg0: i32) -> (i32, i32) {
    %c0_i32 = arith.constant 0 : i32
    %c0_i32_0 = arith.constant 0 : i32
    %c0_i32_1 = arith.constant 0 : i32
    return %c0_i32, %c0_i32_0 : i32, i32
  }
  func.func @transform_3(%arg0: i32) -> (i32, i32) {
    %c0_i32 = arith.constant 0 : i32
    %c0_i32_0 = arith.constant 0 : i32
    %c0_i32_1 = arith.constant 0 : i32
    return %c0_i32, %c0_i32_0 : i32, i32
  }
  func.func @transform_4(%arg0: i32) -> (i32, i32, i32) {
    %c0_i32 = arith.constant 0 : i32
    %c0_i32_0 = arith.constant 0 : i32
    %c0_i32_1 = arith.constant 0 : i32
    return %arg0, %c0_i32, %c0_i32_0 : i32, i32, i32
  }
}

</mosaic_0001>

<bundles_post_ra>
// kernel: tpu_custom_call.1
= control target key start
LH: loop header
LB: loop body
LE: loop exit
PB: predicated region body
PF: predicated region fallthrough
CT: control target
= control target key end

     0   :  { %s1278_s0 = inlined_call_operand.vmem [shape: f32[4,16,128], index: 0, kind: input, shape index: {}]   ;;  %s1279_s1 = inlined_call_operand.vmem [shape: f32[128,16], index: 1, kind: input, shape index: {}]   ;;  %s1280_s2 = inlined_call_operand.vmem [shape: f32[1,16], index: 2, kind: input, shape index: {}]   ;;  %s1281_s3 = inlined_call_operand.vmem [shape: f32[16,16], index: 3, kind: input, shape index: {}]   ;;  %s1282_s4 = inlined_call_operand.hbm [shape: f32[4,16,128], index: 4, kind: output, shape index: {}]  }
   0x1   :  { %v41_v0 = vld [vmem:[%s1279_s1 + $0x78] sm:$0xff]  ;;  %v40_v1 = vld [vmem:[%s1279_s1 + $0x70] sm:$0xff]  ;;  %v39_v2 = vld [vmem:[%s1279_s1 + $0x68] sm:$0xff] }
   0x2   :  { %945 = vmatprep.subr.mxu0 %v41_v0  ;;  %v38_v3 = vld [vmem:[%s1279_s1 + $0x60] sm:$0xff]  ;;  %v37_v5 = vld [vmem:[%s1279_s1 + $0x58] sm:$0xff]  ;;  %v36_v6 = vld [vmem:[%s1279_s1 + $0x50] sm:$0xff] }
   0x3   :  { %946 = vmatpush3.msra.mxu0 %v41_v0  ;;  %v1142_v4 = vld [vmem:[%s1278_s0] sm:$0xff] }
   0x4   :  { %947 = vmatprep.subr.mxu0 %v40_v1  ;;  %977 = vmatprep.mubr.f32.mxu0 %v1142_v4 }
   0x5   :  { %948 = vmatpush3.msra.mxu0 %v40_v1 }
   0x6   :  { %949 = vmatprep.subr.mxu0 %v39_v2 }
   0x7   :  { %950 = vmatpush3.msra.mxu0 %v39_v2 }
   0x8   :  { %951 = vmatprep.subr.mxu0 %v38_v3 }
   0x9   :  { %952 = vmatpush3.msra.mxu0 %v38_v3 }
   0xa   :  { %9 = vsyncpa [#allocation3], 0  ;;  %953 = vmatprep.subr.mxu0 %v37_v5  ;;  %v35_v7 = vld [vmem:[%s1279_s1 + $0x48] sm:$0xff]  ;;  %v34_v8 = vld [vmem:[%s1279_s1 + $0x40] sm:$0xff]  ;;  %vm164_vm0 = vcmask 130048  }
   0xb   :  { %954 = vmatpush3.msra.mxu0 %v37_v5  ;;  %v33_v9 = vld [vmem:[%s1279_s1 + $0x38] sm:$0xff]  ;;  %v32_v10 = vld [vmem:[%s1279_s1 + $0x30] sm:$0xff]  ;;  %v31_v11 = vld [vmem:[%s1279_s1 + $0x28] sm:$0xff] }
   0xc   :  { %955 = vmatprep.subr.mxu0 %v36_v6  ;;  %v30_v12 = vld [vmem:[%s1279_s1 + $0x20] sm:$0xff]  ;;  %v29_v13 = vld [vmem:[%s1279_s1 + $0x18] sm:$0xff]  ;;  %v28_v14 = vld [vmem:[%s1279_s1 + $0x10] sm:$0xff] }
   0xd   :  { %956 = vmatpush3.msra.mxu0 %v36_v6  ;;  %v27_v15 = vld [vmem:[%s1279_s1 + $0x8] sm:$0xff]  ;;  %v26_v16 = vld [vmem:[%s1279_s1] sm:$0xff]  ;;  %v1187_v18 = vld [vmem:[%s1278_s0 + $0x10] sm:$0xff] }
   0xe   :  { %957 = vmatprep.subr.mxu0 %v35_v7  ;;  %v19_v17 = vld [vmem:[%s1278_s0 + $0x8] sm:$0xff]  ;;  %v1193_v19 = vld [vmem:[%s1278_s0 + $0x18] sm:$0xff]  ;;  %v1198_v20 = vld [vmem:[%s1278_s0 + $0x20] sm:$0xff] }
   0xf   :  { %958 = vmatpush3.msra.mxu0 %v35_v7  ;;  %v1205_v21 = vld [vmem:[%s1278_s0 + $0x28] sm:$0xff]  ;;  %v1210_v22 = vld [vmem:[%s1278_s0 + $0x30] sm:$0xff]  ;;  %v1217_v23 = vld [vmem:[%s1278_s0 + $0x38] sm:$0xff]  ;;  %s1099_s0 = smov [#allocation2]  }
  0x10   :  { %959 = vmatprep.subr.mxu0 %v34_v8  ;;  %v163_v24 = vld [vmem:[%s1281_s3 + $0x8] sm:$0xff]  ;;  %v162_v25 = vld [vmem:[%s1281_s3] sm:$0xff] }
  0x11   :  { %960 = vmatpush3.msra.mxu0 %v34_v8  ;;  %989 = vmatprep.subr.mxu1 %v163_v24  ;;  %v878_v26 = vld [vmem:[%s1280_s2] ss:$0 sm:$0xff]  ;;  %s867_s2 = sshll.u32 %s1099_s0, 4  ;;  %s868_s2 = int_to_ptr.vmem [resolvable:$true] %s867_s2 }
  0x12   :  { %961 = vmatprep.subr.mxu0 %v33_v9  ;;  %990 = vmatpush3.msra.mxu1 %v163_v24  ;;  %s1077_s3 = scalar_lea.vmem %s868_s2, 1024  ;;  %p1082_p1 = scmp.lt.s32.totalorder %s868_s2, %s868_s2 }
  0x13   :  { %962 = vmatpush3.msra.mxu0 %v33_v9  ;;  %991 = vmatprep.subr.mxu1 %v162_v25  ;;  %p1078_p0 = scmp.ne.s32.totalorder %s868_s2, %s1077_s3  ;;  %p1083_p2 = scmp.lt.s32.totalorder %s1077_s3, %s1077_s3 }
  0x14   :  { %963 = vmatprep.subr.mxu0 %v32_v10  ;;  %992 = vmatpush3.msra.mxu1 %v162_v25 }
  0x15   :  { %964 = vmatpush3.msra.mxu0 %v32_v10  ;;  %1005 = vmatprep.subr.mxu1 %v19_v17  ;;  %p1084_p3 = por %p1083_p2, %p1082_p1 }
  0x16   :  { %965 = vmatprep.subr.mxu0 %v31_v11 }
  0x17   :  { %966 = vmatpush3.msra.mxu0 %v31_v11  ;;  %p1085_p4 = pnand %p1084_p3, %p1078_p0 }
  0x18   :  { %967 = vmatprep.subr.mxu0 %v30_v12 }
  0x19   :  { %968 = vmatpush3.msra.mxu0 %v30_v12 }
  0x1a   :  { %969 = vmatprep.subr.mxu0 %v29_v13 }
  0x1b   :  { %970 = vmatpush3.msra.mxu0 %v29_v13 }
  0x1c   :  { %971 = vmatprep.subr.mxu0 %v28_v14 }
  0x1d   :  { %972 = vmatpush3.msra.mxu0 %v28_v14 }
  0x1e   :  { %973 = vmatprep.subr.mxu0 %v27_v15 }
  0x1f   :  { %974 = vmatpush3.msra.mxu0 %v27_v15 }
  0x20   :  { %975 = vmatprep.subr.mxu0 %v26_v16 }
  0x21   :  { %976 = vmatpush3.msra.mxu0 %v26_v16 }
  0x22   :  { %978 = vmatmul.mubr.f32.vlgmr.msra.gmra.mxu0 %v19_v17 }
  0x23   :  { %980 = vmatprep.mubr.f32.mxu0 %v1187_v18 }
  0x26   :  { %981 = vmatmul.mubr.f32.gmra.mxu0 %v1193_v19 }
  0x27   :  { %983 = vmatprep.mubr.f32.mxu0 %v1198_v20 }
  0x2a   :  { %984 = vmatmul.mubr.f32.gmra.mxu0 %v1205_v21 }
  0x2b   :  { %986 = vmatprep.mubr.f32.mxu0 %v1210_v22 }
  0x2e   :  { %987 = vmatmul.mubr.f32.gmra.mxu0 %v1217_v23 }
  0xe2   :  { %v979_v27 = vpop.f32.mrf.mxu0 }
  0xe3   :  { %v121_v28 = vadd.f32 %v979_v27, %v878_v26 }
  0xe4   :  { %v115_v29 = vpop.f32.mrf.mxu0 }
  0xe5   :  { %v116_v30 = vadd.f32 %v878_v26, %v115_v29 }
  0xe6   :  { %v982_v31 = vpop.f32.mrf.mxu0 }
  0xe7   :  { %1037 = vtanh.f32 %v116_v30  ;;  %v131_v32 = vadd.f32 %v982_v31, %v878_v26 }
  0xe8   :  { %1039 = vtanh.f32 %v121_v28  ;;  %v125_v33 = vpop.f32.mrf.mxu0 }
  0xe9   :  { %v126_v34 = vadd.f32 %v878_v26, %v125_v33 }
  0xea   :  { %v985_v35 = vpop.f32.mrf.mxu0 }
  0xeb   :  { %1041 = vtanh.f32 %v126_v34  ;;  %v141_v36 = vadd.f32 %v985_v35, %v878_v26 }
  0xec   :  { %1043 = vtanh.f32 %v131_v32  ;;  %v135_v37 = vpop.f32.mrf.mxu0 }
  0xed   :  { %v136_v38 = vadd.f32 %v878_v26, %v135_v37 }
  0xee   :  { %v988_v39 = vpop.f32.mrf.mxu0 }
  0xef   :  { %1045 = vtanh.f32 %v136_v38  ;;  %v151_v40 = vadd.f32 %v988_v39, %v878_v26 }
  0xf0   :  { %1047 = vtanh.f32 %v141_v36  ;;  %v145_v41 = vpop.f32.mrf.mxu0 }
  0xf1   :  { %v146_v42 = vadd.f32 %v878_v26, %v145_v41 }
  0xf3   :  { %1049 = vtanh.f32 %v146_v42 }
  0xf4   :  { %v1038_v43 = vpop.eup %1037  ;;  %1051 = vtanh.f32 %v151_v40 }
  0xf5   :  { %v1040_v44 = vpop.eup %1039  ;;  %993 = vmatprep.mubr.msk.f32.mxu1 %vm164_vm0, %v1038_v43 }
  0xf6   :  { %994 = vmatmul.mubr.msk.f32.vlgmr.msra.gmra.mxu1 %vm164_vm0, %v1040_v44 }
  0xf7   :  { %1006 = vmatpush3.msra.mxu1 %v19_v17 }
  0xf8   :  { %v1042_v45 = vpop.eup %1041  ;;  %1007 = vmatprep.subr.mxu1 %v1142_v4 }
  0xf9   :  { %v1044_v46 = vpop.eup %1043  ;;  %996 = vmatprep.mubr.msk.f32.mxu1 %vm164_vm0, %v1042_v45  ;;  %1008 = vmatpush3.msra.mxu1 %v1142_v4 }
  0xfa   :  { %997 = vmatmul.mubr.msk.f32.gmra.mxu1 %vm164_vm0, %v1044_v46  ;;  %1012 = vmatprep.subr.mxu1 %v1193_v19 }
  0xfc   :  { %v1046_v47 = vpop.eup %1045 }
  0xfd   :  { %v1048_v48 = vpop.eup %1047  ;;  %999 = vmatprep.mubr.msk.f32.mxu1 %vm164_vm0, %v1046_v47 }
  0xfe   :  { %1000 = vmatmul.mubr.msk.f32.gmra.mxu1 %vm164_vm0, %v1048_v48 }
 0x100   :  { %v1050_v49 = vpop.eup %1049 }
 0x101   :  { %v1052_v50 = vpop.eup %1051  ;;  %1002 = vmatprep.mubr.msk.f32.mxu1 %vm164_vm0, %v1050_v49 }
 0x102   :  { %1003 = vmatmul.mubr.msk.f32.gmra.mxu1 %vm164_vm0, %v1052_v50 }
 0x1b6   :  { %v995_v51 = vpop.f32.mrf.mxu1 }
 0x1b7   :  { %v295_v53 = vsel %vm164_vm0, %v995_v51, -inf }
 0x1b8   :  { %v255_v52 = vpop.f32.mrf.mxu1 }
 0x1b9   :  { %v294_v54 = vsel %vm164_vm0, %v255_v52, -inf }
 0x1ba   :  { %v296_v55 = vmax.f32 %v294_v54, %v295_v53  ;;  %v998_v56 = vpop.f32.mrf.mxu1 }
 0x1bb   :  { %v304_v59 = vsel %vm164_vm0, %v998_v56, -inf }
 0x1bc   :  { %v297_v57 = vrot.slane %v296_v55, 4  ;;  %v265_v58 = vpop.f32.mrf.mxu1 }
 0x1bd   :  { %v303_v60 = vsel %vm164_vm0, %v265_v58, -inf }
 0x1be   :  { %v298_v61 = vmax.f32 %v296_v55, %v297_v57  ;;  %v305_v62 = vmax.f32 %v303_v60, %v304_v59  ;;  %v1001_v63 = vpop.f32.mrf.mxu1 }
 0x1bf   :  { %v313_v3 = vsel %vm164_vm0, %v1001_v63, -inf }
 0x1c0   :  { %v299_v0 = vrot.slane %v298_v61, 2  ;;  %v306_v1 = vrot.slane %v305_v62, 4  ;;  %v275_v2 = vpop.f32.mrf.mxu1 }
 0x1c1   :  { %v312_v4 = vsel %vm164_vm0, %v275_v2, -inf }
 0x1c2   :  { %v300_v5 = vmax.f32 %v298_v61, %v299_v0  ;;  %v307_v6 = vmax.f32 %v305_v62, %v306_v1  ;;  %v314_v7 = vmax.f32 %v312_v4, %v313_v3  ;;  %v1004_v8 = vpop.f32.mrf.mxu1 }
 0x1c3   :  { %v322_v13 = vsel %vm164_vm0, %v1004_v8, -inf }
 0x1c4   :  { %v301_v9 = vrot.slane %v300_v5, 1  ;;  %v308_v10 = vrot.slane %v307_v6, 2  ;;  %v315_v11 = vrot.slane %v314_v7, 4  ;;  %v285_v12 = vpop.f32.mrf.mxu1 }
 0x1c5   :  { %v321_v14 = vsel %vm164_vm0, %v285_v12, -inf }
 0x1c6   :  { %v302_v15 = vmax.f32 %v300_v5, %v301_v9  ;;  %v309_v16 = vmax.f32 %v307_v6, %v308_v10  ;;  %v316_v17 = vmax.f32 %v314_v7, %v315_v11  ;;  %v323_v24 = vmax.f32 %v321_v14, %v322_v13 }
 0x1c8   :  { %v330_v25 = vsub.f32 %v255_v52, %v302_v15  ;;  %v331_v26 = vsub.f32 %v995_v51, %v302_v15  ;;  %v310_v27 = vrot.slane %v309_v16, 1  ;;  %v317_v28 = vrot.slane %v316_v17, 2 }
 0x1c9   :  { %v324_v29 = vrot.slane %v323_v24, 4 }
 0x1ca   :  { %v338_v30 = vmul.f32 1.442695, %v330_v25  ;;  %v340_v31 = vmul.f32 1.442695, %v331_v26  ;;  %v311_v32 = vmax.f32 %v309_v16, %v310_v27  ;;  %v318_v33 = vmax.f32 %v316_v17, %v317_v28 }
 0x1cb   :  { %v325_v34 = vmax.f32 %v323_v24, %v324_v29 }
 0x1cc   :  { %1053 = vpow2.f32 %v338_v30  ;;  %v332_v35 = vsub.f32 %v265_v58, %v311_v32  ;;  %v333_v36 = vsub.f32 %v998_v56, %v311_v32  ;;  %v319_v37 = vrot.slane %v318_v33, 1 }
 0x1cd   :  { %1055 = vpow2.f32 %v340_v31  ;;  %v326_v38 = vrot.slane %v325_v34, 2 }
 0x1ce   :  { %v342_v39 = vmul.f32 1.442695, %v332_v35  ;;  %v344_v40 = vmul.f32 1.442695, %v333_v36  ;;  %v320_v41 = vmax.f32 %v318_v33, %v319_v37 }
 0x1cf   :  { %v327_v42 = vmax.f32 %v325_v34, %v326_v38 }
 0x1d0   :  { %1057 = vpow2.f32 %v342_v39  ;;  %v334_v43 = vsub.f32 %v275_v2, %v320_v41  ;;  %v335_v44 = vsub.f32 %v1001_v63, %v320_v41 }
 0x1d1   :  { %1059 = vpow2.f32 %v344_v40  ;;  %v328_v45 = vrot.slane %v327_v42, 1 }
 0x1d2   :  { %v346_v46 = vmul.f32 1.442695, %v334_v43  ;;  %v348_v47 = vmul.f32 1.442695, %v335_v44 }
 0x1d3   :  { %v329_v48 = vmax.f32 %v327_v42, %v328_v45 }
 0x1d4   :  { %1061 = vpow2.f32 %v346_v46 }
 0x1d5   :  { %1063 = vpow2.f32 %v348_v47  ;;  %v336_v49 = vsub.f32 %v285_v12, %v329_v48  ;;  %v337_v50 = vsub.f32 %v1004_v8, %v329_v48 }
 0x1d7   :  { %v350_v51 = vmul.f32 1.442695, %v336_v49  ;;  %v352_v52 = vmul.f32 1.442695, %v337_v50 }
 0x1d9   :  { %v1054_v53 = vpop.eup %1053  ;;  %1065 = vpow2.f32 %v350_v51 }
 0x1da   :  { %v1056_v54 = vpop.eup %1055  ;;  %v354_v55 = vsel %vm164_vm0, %v1054_v53, 0.0  ;;  %1067 = vpow2.f32 %v352_v52 }
 0x1db   :  { %v355_v56 = vsel %vm164_vm0, %v1056_v54, 0.0 }
 0x1dc   :  { %v356_v57 = vadd.f32 %v355_v56, %v354_v55 }
 0x1dd   :  { %v1058_v58 = vpop.eup %1057 }
 0x1de   :  { %v1060_v59 = vpop.eup %1059  ;;  %v357_v60 = vrot.slane %v356_v57, 4  ;;  %v363_v61 = vsel %vm164_vm0, %v1058_v58, 0.0 }
 0x1df   :  { %v364_v62 = vsel %vm164_vm0, %v1060_v59, 0.0 }
 0x1e0   :  { %v365_v63 = vadd.f32 %v364_v62, %v363_v61  ;;  %v358_v0 = vadd.f32 %v357_v60, %v356_v57 }
 0x1e1   :  { %v1062_v1 = vpop.eup %1061 }
 0x1e2   :  { %v1064_v2 = vpop.eup %1063  ;;  %v366_v3 = vrot.slane %v365_v63, 4  ;;  %v372_v4 = vsel %vm164_vm0, %v1062_v1, 0.0  ;;  %v359_v5 = vrot.slane %v358_v0, 2 }
 0x1e3   :  { %v373_v6 = vsel %vm164_vm0, %v1064_v2, 0.0 }
 0x1e4   :  { %v374_v7 = vadd.f32 %v373_v6, %v372_v4  ;;  %v360_v8 = vadd.f32 %v359_v5, %v358_v0  ;;  %v367_v9 = vadd.f32 %v366_v3, %v365_v63 }
 0x1e6   :  { %v1066_v10 = vpop.eup %1065  ;;  %v375_v11 = vrot.slane %v374_v7, 4  ;;  %v361_v12 = vrot.slane %v360_v8, 1  ;;  %v368_v13 = vrot.slane %v367_v9, 2 }
 0x1e7   :  { %v1068_v14 = vpop.eup %1067  ;;  %v381_v15 = vsel %vm164_vm0, %v1066_v10, 0.0 }
 0x1e8   :  { %v376_v16 = vadd.f32 %v375_v11, %v374_v7  ;;  %v382_v17 = vsel %vm164_vm0, %v1068_v14, 0.0  ;;  %v362_v24 = vadd.f32 %v361_v12, %v360_v8  ;;  %v369_v25 = vadd.f32 %v368_v13, %v367_v9 }
 0x1e9   :  { %v383_v26 = vadd.f32 %v382_v17, %v381_v15 }
 0x1ea   :  { %1069 = vrcp.f32 %v362_v24  ;;  %v370_v27 = vrot.slane %v369_v25, 1  ;;  %v377_v28 = vrot.slane %v376_v16, 2 }
 0x1eb   :  { %v384_v29 = vrot.slane %v383_v26, 4 }
 0x1ec   :  { %v371_v30 = vadd.f32 %v370_v27, %v369_v25  ;;  %v378_v31 = vadd.f32 %v377_v28, %v376_v16 }
 0x1ed   :  { %v385_v32 = vadd.f32 %v384_v29, %v383_v26 }
 0x1ee   :  { %1071 = vrcp.f32 %v371_v30  ;;  %v379_v33 = vrot.slane %v378_v31, 1 }
 0x1ef   :  { %v386_v34 = vrot.slane %v385_v32, 2 }
 0x1f0   :  { %v380_v35 = vadd.f32 %v379_v33, %v378_v31 }
 0x1f1   :  { %v387_v36 = vadd.f32 %v386_v34, %v385_v32 }
 0x1f2   :  { %1073 = vrcp.f32 %v380_v35 }
 0x1f3   :  { %v388_v37 = vrot.slane %v387_v36, 1 }
 0x1f5   :  { %v389_v38 = vadd.f32 %v388_v37, %v387_v36 }
 0x1f7   :  { %v1070_v39 = vpop.eup %1069  ;;  %1075 = vrcp.f32 %v389_v38 }
 0x1f8   :  { %v394_v40 = vmul.f32 %v1070_v39, %v1054_v53  ;;  %v395_v42 = vmul.f32 %v1070_v39, %v1056_v54 }
 0x1fa   :  { %402 = vxpose.xlu0.b32.start [1/2] (short) (narrow) %v394_v40, 16 }
 0x1fb   :  { %v1072_v41 = vpop.eup %1071 }
 0x1fc   :  { %v396_v43 = vmul.f32 %v1072_v41, %v1058_v58  ;;  %v397_v45 = vmul.f32 %v1072_v41, %v1060_v59 }
 0x1fe   :  { %403 = vxpose.xlu0.b32.end [2/2] (short) (narrow) %v395_v42, 16  ;;  %515 = vxpose.xlu1.b32.start [1/2] (short) (narrow) %v396_v43, 16 }
 0x1ff   :  { %v1074_v44 = vpop.eup %1073 }
 0x200   :  { %v398_v46 = vmul.f32 %v1074_v44, %v1062_v1  ;;  %v399_v48 = vmul.f32 %v1074_v44, %v1064_v2 }
 0x202   :  { %516 = vxpose.xlu1.b32.end [2/2] (short) (narrow) %v397_v45, 16  ;;  %628 = vxpose.xlu0.b32.start [1/2] (short) (narrow) %v398_v46, 16 }
 0x204   :  { %v1076_v47 = vpop.eup %1075 }
 0x205   :  { %v400_v49 = vmul.f32 %v1076_v47, %v1066_v10  ;;  %v401_v50 = vmul.f32 %v1076_v47, %v1068_v14 }
 0x206   :  { %629 = vxpose.xlu0.b32.end [2/2] (short) (narrow) %v399_v48, 16 }
 0x207   :  { %741 = vxpose.xlu1.b32.start [1/2] (short) (narrow) %v400_v49, 16 }
 0x20b   :  { %742 = vxpose.xlu1.b32.end [2/2] (short) (narrow) %v401_v50, 16 }
 0x276   :  { %v418_v51 = vpop.trf.xlu0 }
 0x277   :  { %1009 = vmatprep.mubr.msk.f32.mxu1 %vm164_vm0, %v418_v51 }
 0x27a   :  { %v419_v52 = vpop.trf.xlu0  ;;  %v531_v53 = vpop.trf.xlu1 }
 0x27b   :  { %1010 = vmatmul.mubr.msk.f32.vlgmr.msra.gmra.mxu1 %vm164_vm0, %v419_v52 }
 0x27c   :  { %1013 = vmatpush3.msra.mxu1 %v1193_v19  ;;  %1016 = vmatprep.mubr.msk.f32.mxu1 %vm164_vm0, %v531_v53 }
 0x27d   :  { %1014 = vmatprep.subr.mxu1 %v1187_v18 }
 0x27e   :  { %1015 = vmatpush3.msra.mxu1 %v1187_v18  ;;  %v532_v54 = vpop.trf.xlu1  ;;  %v644_v55 = vpop.trf.xlu0 }
 0x27f   :  { %1019 = vmatprep.subr.mxu1 %v1205_v21  ;;  %1017 = vmatmul.mubr.msk.f32.vlgmr.msra.gmra.mxu1 %vm164_vm0, %v532_v54 }
 0x280   :  { %1020 = vmatpush3.msra.mxu1 %v1205_v21  ;;  %1023 = vmatprep.mubr.msk.f32.mxu1 %vm164_vm0, %v644_v55 }
 0x281   :  { %1021 = vmatprep.subr.mxu1 %v1198_v20 }
 0x282   :  { %1022 = vmatpush3.msra.mxu1 %v1198_v20  ;;  %v645_v19 = vpop.trf.xlu0 }
 0x283   :  { %1026 = vmatprep.subr.mxu1 %v1217_v23  ;;  %v757_v56 = vpop.trf.xlu1  ;;  %1024 = vmatmul.mubr.msk.f32.vlgmr.msra.gmra.mxu1 %vm164_vm0, %v645_v19 }
 0x284   :  { %1027 = vmatpush3.msra.mxu1 %v1217_v23  ;;  %1030 = vmatprep.mubr.msk.f32.mxu1 %vm164_vm0, %v757_v56 }
 0x285   :  { %1028 = vmatprep.subr.mxu1 %v1210_v22 }
 0x286   :  { %1029 = vmatpush3.msra.mxu1 %v1210_v22 }
 0x287   :  { %v758_v18 = vpop.trf.xlu1 }
 0x288   :  { %1031 = vmatmul.mubr.msk.f32.vlgmr.msra.gmra.mxu1 %vm164_vm0, %v758_v18 }
 0x33b   :  { %v1011_v21 = vpop.f32.mrf.mxu1 }
 0x33c   :  { %855 = vst [vmem:[#allocation2 + $0x8] sm:$0xff] %v1011_v21 }
 0x33d   :  { %v506_v20 = vpop.f32.mrf.mxu1 }
 0x33e   :  { %854 = vst [vmem:[#allocation2] sm:$0xff] %v506_v20 }
 0x33f   :  { %v1018_v57 = vpop.f32.mrf.mxu1 }
 0x340   :  { %857 = vst [vmem:[#allocation2 + $0x18] sm:$0xff] %v1018_v57 }
 0x341   :  { %v619_v58 = vpop.f32.mrf.mxu1 }
 0x342   :  { %856 = vst [vmem:[#allocation2 + $0x10] sm:$0xff] %v619_v58 }
 0x343   :  { %v1025_v59 = vpop.f32.mrf.mxu1 }
 0x344   :  { %859 = vst [vmem:[#allocation2 + $0x28] sm:$0xff] %v1025_v59 }
 0x345   :  { %v732_v23 = vpop.f32.mrf.mxu1 }
 0x346   :  { %858 = vst [vmem:[#allocation2 + $0x20] sm:$0xff] %v732_v23 }
 0x348   :  { %v1032_v60 = vpop.f32.mrf.mxu1 }
 0x349   :  { %861 = vst [vmem:[#allocation2 + $0x38] sm:$0xff] %v1032_v60 }
 0x34a   :  { %v845_v22 = vpop.f32.mrf.mxu1 }
 0x34b   :  { %860 = vst [vmem:[#allocation2 + $0x30] sm:$0xff] %v845_v22 }
 0x34c   :  { %1088 = shalt.err (!%p1085_p4)
}
 0x34d   :  { %s1100_s16 = smov 128   ;;  %s1101_s17 = smov 8  }
 0x34e   :  { %873 = dma.vmem_to_hbm [thread:$0]  %s868_s2, 1024, %s1282_s4, [#allocation3], %s1100_s16, %s1100_s16, %s1101_s17  }
 0x34f   :  { %1097 = dma.done.wait [#allocation3], 1024  }
 0x350   :  { %1098 = vsyncadd [#allocation3], 4294966272 }
 0x351   :  { %877 = vsyncpa [#allocation3], 1 }

</bundles_post_ra>
